<compile_context>
chip_gen: v7x
topology: tpu7x:2x2x1
jax: 0.10.0
libtpu: 0.0.40
codegen_flags: <defaults>
</compile_context>

<pallas_src>
import jax
import jax.numpy as jnp
from jax.experimental import pallas as pl
from jax.experimental.pallas import tpu as pltpu

EPS = 1e-6
P_APPLY = 0.5
ALPHA = 0.1

_MIB = 1024 * 1024
# dtype-native sublane multiple: f32 -> 8, bf16/f16 -> 16, int8/fp8 -> 32.
_SUBLANE = {4: 8, 2: 16, 1: 32}


def _vmem_budget_bytes():
    """Usable scoped-VMEM budget on the running chip (generation aware)."""
    try:
        cap = int(pltpu.get_tpu_info().vmem_capacity_bytes)
    except Exception:
        cap = 64 * _MIB                      # conservative (v7x-sized) fallback
    return max(24 * _MIB, min(cap * 3 // 4, cap - 16 * _MIB))


def _round_up(v, m):
    return ((v + m - 1) // m) * m


def _pick_row_block(rows, per_row_vmem, itemsize, budget):
    """Rows per grid step: VMEM footprint of the pass stays <= ~budget/2,
    block is a dtype-native sublane multiple, and there are >=2 grid steps
    whenever legal so ("parallel",) can shard across v7x's two TensorCores."""
    mult = _SUBLANE.get(itemsize, 8)
    tr = max(1, (budget // 2) // max(1, per_row_vmem))
    tr = max(mult, (tr // mult) * mult)
    if tr >= rows:
        if rows >= 2 * mult:
            tr = min(_round_up(-(-rows // 2), mult), rows)
        else:
            tr = rows
    return tr


# ----------------------------- kernels --------------------------------------


def _stats_kernel(x_ref, mu_ref, sig_ref):
    """Per-row mean / unbiased sigma, two-pass variance (numerically safe)."""
    x = x_ref[...].astype(jnp.float32)                      # (TR, HW)
    n = x.shape[-1]
    mu = jnp.mean(x, axis=-1, keepdims=True)                # (TR, 1)
    xc = x - mu
    var = jnp.sum(xc * xc, axis=-1, keepdims=True) * (1.0 / (n - 1))
    mu_ref[...] = mu
    sig_ref[...] = jnp.sqrt(var + EPS)


def _apply_kernel(x_ref, ss_ref, o_ref):
    """out = x * scale + shift; scale/shift packed as lanes 0/1 of ss."""
    x = x_ref[...].astype(jnp.float32)                      # (TR, HW)
    ss = ss_ref[...]                                        # (TR, 2) f32
    o_ref[...] = (x * ss[:, 0:1] + ss[:, 1:2]).astype(o_ref.dtype)


def _fused_kernel(x_ref, p_ref, lam_ref, o_ref):
    """Single-pass MixStyle for VMEM-resident x: stats + perm-mix + affine."""
    x = x_ref[...].astype(jnp.float32)                      # (B, C, HW)
    n = x.shape[-1]
    mu = jnp.mean(x, axis=-1)                               # (B, C)
    xc = x - mu[:, :, None]                                 # two-pass variance
    var = jnp.sum(xc * xc, axis=-1) * (1.0 / (n - 1))       # (B, C) unbiased
    sig = jnp.sqrt(var + EPS)
    perm_mat = p_ref[...]                                   # (B, B) one_hot(perm)
    mu2 = jnp.dot(perm_mat, mu, preferred_element_type=jnp.float32)
    sig2 = jnp.dot(perm_mat, sig, preferred_element_type=jnp.float32)
    lam = lam_ref[...]                                      # (B, 1)
    mu_mix = mu * lam + mu2 * (1.0 - lam)
    sig_mix = sig * lam + sig2 * (1.0 - lam)
    scale = sig_mix / sig                                   # tiny (B,C) divide
    o_ref[...] = (xc * scale[:, :, None] + mu_mix[:, :, None]).astype(o_ref.dtype)


# ------------------------- pallas_call wrappers ------------------------------


def _row_stats(x2, tr, vmem_limit):
    rows, hw = x2.shape
    grid = (pl.cdiv(rows, tr),)
    return pl.pallas_call(
        _stats_kernel,
        out_shape=(jax.ShapeDtypeStruct((rows, 1), jnp.float32),
                   jax.ShapeDtypeStruct((rows, 1), jnp.float32)),
        grid_spec=pltpu.PrefetchScalarGridSpec(
            num_scalar_prefetch=0,
            grid=grid,
            in_specs=[pl.BlockSpec((tr, hw), lambda i: (i, 0))],
            out_specs=[pl.BlockSpec((tr, 1), lambda i: (i, 0)),
                       pl.BlockSpec((tr, 1), lambda i: (i, 0))],
        ),
        compiler_params=pltpu.CompilerParams(
            dimension_semantics=("parallel",),
            vmem_limit_bytes=int(vmem_limit)),
    )(x2)


def _row_affine(x2, ss, tr, vmem_limit, donate_x):
    rows, hw = x2.shape
    grid = (pl.cdiv(rows, tr),)
    return pl.pallas_call(
        _apply_kernel,
        out_shape=jax.ShapeDtypeStruct((rows, hw), x2.dtype),
        grid_spec=pltpu.PrefetchScalarGridSpec(
            num_scalar_prefetch=0,
            grid=grid,
            in_specs=[pl.BlockSpec((tr, hw), lambda i: (i, 0)),
                      pl.BlockSpec((tr, 2), lambda i: (i, 0))],
            out_specs=pl.BlockSpec((tr, hw), lambda i: (i, 0)),
        ),
        compiler_params=pltpu.CompilerParams(
            dimension_semantics=("parallel",),
            vmem_limit_bytes=int(vmem_limit)),
        input_output_aliases=({0: 0} if donate_x else {}),
    )(x2, ss)


def _fused_call(x3, perm_mat, lam_col, vmem_limit, donate_x):
    B, C, hw = x3.shape
    return pl.pallas_call(
        _fused_kernel,
        out_shape=jax.ShapeDtypeStruct((B, C, hw), x3.dtype),
        grid_spec=pltpu.PrefetchScalarGridSpec(
            num_scalar_prefetch=0,
            grid=(1,),
            in_specs=[pl.BlockSpec((B, C, hw), lambda i: (0, 0, 0)),
                      pl.BlockSpec((B, B), lambda i: (0, 0)),
                      pl.BlockSpec((B, 1), lambda i: (0, 0))],
            out_specs=pl.BlockSpec((B, C, hw), lambda i: (0, 0, 0)),
        ),
        compiler_params=pltpu.CompilerParams(
            dimension_semantics=("arbitrary",),
            vmem_limit_bytes=int(vmem_limit)),
        input_output_aliases=({0: 0} if donate_x else {}),
    )(x3, perm_mat, lam_col)


# ------------------------------- API -----------------------------------------


def mixstyle_pallas(x, lmda, perm, *, donate_x=False, force_two_pass=False):
    """Applies the MixStyle transform (the 'mix' branch of forward)."""
    B, C, H, W = x.shape
    hw = H * W
    if hw <= 1:
        raise ValueError("MixStyle requires H*W > 1 (unbiased variance).")
    rows = B * C
    budget = _vmem_budget_bytes()
    lam_col = lmda.reshape(B, 1).astype(jnp.float32)

    # ---- fused single-pass path: x VMEM-resident, 2x|x| HBM traffic --------
    x_f32_bytes = rows * hw * 4
    fused_ok = (not force_two_pass) and (8 * x_f32_bytes + 8 * B * B <= budget)
    if fused_ok:
        perm_mat = jax.nn.one_hot(perm, B, dtype=jnp.float32)   # row i -> perm[i]
        out3 = _fused_call(x.reshape(B, C, hw), perm_mat, lam_col, budget,
                           donate_x)
        return out3.reshape(B, C, H, W)

    # ---- two-pass fallback for large x: stats + folded affine (3x|x|) ------
    x2 = x.reshape(rows, hw)
    item = x.dtype.itemsize
    # Per-row VMEM footprint estimates (double-buffered streams + f32 temps +
    # lane-padded narrow stat buffers); used to size blocks against `budget`.
    stats_row = hw * (2 * item + 8) + 2048
    apply_row = hw * (4 * item + 8) + 1024
    tr_stats = _pick_row_block(rows, stats_row, item, budget)
    tr_apply = _pick_row_block(rows, apply_row, item, budget)

    mu, sig = _row_stats(x2, tr_stats, budget)                  # (rows,1) f32
    mu = mu.reshape(B, C)
    sig = sig.reshape(B, C)

    # O(B*C) glue: perm-gather stats, mix with lambda, fold into one affine.
    mu2, sig2 = mu[perm], sig[perm]
    mu_mix = mu * lam_col + mu2 * (1.0 - lam_col)
    sig_mix = sig * lam_col + sig2 * (1.0 - lam_col)
    scale = sig_mix / sig
    shift = mu_mix - mu * scale
    ss = jnp.stack([scale, shift], axis=-1).reshape(rows, 2)    # packed f32

    out2 = _row_affine(x2, ss, tr_apply, budget, donate_x)
    return out2.reshape(B, C, H, W)


def mixstyle_forward(x, key, *, training=True, activated=True, p=P_APPLY,
                     alpha=ALPHA):
    """Full MixStyle.forward semantics.

    The p-coin flip mirrors the PyTorch module's Python-level random.random()
    gate, so this wrapper is host-side glue and must NOT be wrapped in jax.jit
    (inside jit, replace the `if` with lax.cond / jnp.where).
    """
    if not training or not activated:
        return x
    B = x.shape[0]
    k_coin, k_beta, k_perm = jax.random.split(key, 3)
    if float(jax.random.uniform(k_coin, ())) > p:   # random.random() > p -> skip
        return x
    lmda = jax.random.beta(k_beta, alpha, alpha, shape=(B,), dtype=jnp.float32)
    perm = jax.random.permutation(k_perm, B)
    return mixstyle_pallas(x, lmda, perm)


def _mixstyle_ref(x, lmda, perm):
    """Pure-JAX reference mirroring the PyTorch code, for verification."""
    mu = jnp.mean(x, axis=(2, 3), keepdims=True)
    var = jnp.var(x, axis=(2, 3), keepdims=True, ddof=1)
    sig = jnp.sqrt(var + EPS)
    x_normed = (x - mu) / sig
    l = lmda.reshape(-1, 1, 1, 1)
    mu2, sig2 = mu[perm], sig[perm]
    mu_mix = mu * l + mu2 * (1.0 - l)
    sig_mix = sig * l + sig2 * (1.0 - l)
    return x_normed * sig_mix + mu_mix


if __name__ == "__main__":
    key = jax.random.PRNGKey(0)
    k_x, k_beta, k_perm = jax.random.split(key, 3)

    B, C, H, W = 2, 4, 16, 16
    # Large mean offset stresses the variance computation (two-pass in-kernel).
    x = 0.5 * jax.random.normal(k_x, (B, C, H, W), dtype=jnp.float32) + 10.0

    lmda = jax.random.beta(k_beta, ALPHA, ALPHA, shape=(B,), dtype=jnp.float32)
    perm = jax.random.permutation(k_perm, B)

    ref = _mixstyle_ref(x, lmda, perm)

    # Fused single-pass path (x fits VMEM at this size).
    out_fused = jax.block_until_ready(mixstyle_pallas(x, lmda, perm))
    assert out_fused.shape == x.shape and out_fused.dtype == x.dtype
    assert jnp.allclose(out_fused, ref, rtol=1e-4, atol=1e-3), "fused mismatch"

    # Two-pass (stats + affine) fallback path, exercised explicitly.
    out_two = jax.block_until_ready(
        mixstyle_pallas(x, lmda, perm, force_two_pass=True))
    assert out_two.shape == x.shape and out_two.dtype == x.dtype
    assert jnp.allclose(out_two, ref, rtol=1e-4, atol=1e-3), "two-pass mismatch"

    # Full forward wrapper (host-side p-gate / Beta / randperm sampling).
    y = jax.block_until_ready(mixstyle_forward(x, jax.random.PRNGKey(1)))
    assert y.shape == x.shape and y.dtype == x.dtype

    print("KERNEL_OK")
</pallas_src>

<mosaic_0001>
module attributes {stable_mosaic.version = 11 : i64} {
  func.func @_fused_kernel(%arg0: i32, %arg1: memref<2x4x256xf32, #tpu.memory_space<vmem>>, %arg2: memref<2x2xf32, #tpu.memory_space<vmem>>, %arg3: memref<2x1xf32, #tpu.memory_space<vmem>>, %arg4: memref<2x4x256xf32, #tpu.memory_space<vmem>>) attributes {dimension_semantics = [#tpu.dimension_semantics<arbitrary>], iteration_bounds = array<i64: 1>, scalar_prefetch = 0 : i64, scratch_operands = 0 : i64, tpu.core_type = #tpu.core_type<tc>, window_params = [{pipeline_mode = #tpu.pipeline_mode<synchronous>, transform_indices = @transform_0, window_bounds = array<i64: 2, 4, 256>}, {pipeline_mode = #tpu.pipeline_mode<synchronous>, transform_indices = @transform_1, window_bounds = array<i64: 2, 2>}, {pipeline_mode = #tpu.pipeline_mode<synchronous>, transform_indices = @transform_2, window_bounds = array<i64: 2, 1>}, {pipeline_mode = #tpu.pipeline_mode<synchronous>, transform_indices = @transform_3, window_bounds = array<i64: 2, 4, 256>}]} {
    %c0 = arith.constant 0 : index
    %c0_0 = arith.constant 0 : index
    %c0_1 = arith.constant 0 : index
    %0 = vector.load %arg1[%c0, %c0_0, %c0_1] : memref<2x4x256xf32, #tpu.memory_space<vmem>>, vector<2x4x256xf32>
    %cst = arith.constant dense<0.000000e+00> : vector<2x4xf32>
    %1 = vector.multi_reduction <add>, %0, %cst [2] : vector<2x4x256xf32> to vector<2x4xf32>
    %cst_2 = arith.constant 2.560000e+02 : f32
    %2 = vector.broadcast %cst_2 : f32 to vector<2x4xf32>
    %3 = arith.divf %1, %2 : vector<2x4xf32>
    %4 = vector.shape_cast %3 : vector<2x4xf32> to vector<2x4x1xf32>
    %5 = vector.broadcast %4 : vector<2x4x1xf32> to vector<2x4x256xf32>
    %6 = arith.subf %0, %5 : vector<2x4x256xf32>
    %7 = arith.mulf %6, %6 : vector<2x4x256xf32>
    %cst_3 = arith.constant dense<0.000000e+00> : vector<2x4xf32>
    %8 = vector.multi_reduction <add>, %7, %cst_3 [2] : vector<2x4x256xf32> to vector<2x4xf32>
    %cst_4 = arith.constant 0.00392156886 : f32
    %9 = vector.broadcast %cst_4 : f32 to vector<2x4xf32>
    %10 = arith.mulf %8, %9 : vector<2x4xf32>
    %cst_5 = arith.constant 9.99999997E-7 : f32
    %11 = vector.broadcast %cst_5 : f32 to vector<2x4xf32>
    %12 = arith.addf %10, %11 : vector<2x4xf32>
    %13 = math.sqrt %12 : vector<2x4xf32>
    %c0_6 = arith.constant 0 : index
    %c0_7 = arith.constant 0 : index
    %14 = vector.load %arg2[%c0_6, %c0_7] : memref<2x2xf32, #tpu.memory_space<vmem>>, vector<2x2xf32>
    %cst_8 = arith.constant dense<0.000000e+00> : vector<2x4xf32>
    %15 = tpu.matmul %14, %3, %cst_8 {dimension_numbers = #tpu.dot_dimension_numbers<[1], [0], [0], [1], [0, 0, 1, 1], [], []>} : vector<2x2xf32>, vector<2x4xf32>, vector<2x4xf32> -> vector<2x4xf32>
    %cst_9 = arith.constant dense<0.000000e+00> : vector<2x4xf32>
    %16 = tpu.matmul %14, %13, %cst_9 {dimension_numbers = #tpu.dot_dimension_numbers<[1], [0], [0], [1], [0, 0, 1, 1], [], []>} : vector<2x2xf32>, vector<2x4xf32>, vector<2x4xf32> -> vector<2x4xf32>
    %c0_10 = arith.constant 0 : index
    %c0_11 = arith.constant 0 : index
    %17 = vector.load %arg3[%c0_10, %c0_11] : memref<2x1xf32, #tpu.memory_space<vmem>>, vector<2x1xf32>
    %18 = vector.broadcast %17 : vector<2x1xf32> to vector<2x4xf32>
    %19 = arith.mulf %3, %18 : vector<2x4xf32>
    %cst_12 = arith.constant 1.000000e+00 : f32
    %20 = vector.broadcast %cst_12 : f32 to vector<2x1xf32>
    %21 = arith.subf %20, %17 : vector<2x1xf32>
    %22 = vector.broadcast %21 : vector<2x1xf32> to vector<2x4xf32>
    %23 = arith.mulf %15, %22 : vector<2x4xf32>
    %24 = arith.addf %19, %23 : vector<2x4xf32>
    %25 = vector.broadcast %17 : vector<2x1xf32> to vector<2x4xf32>
    %26 = arith.mulf %13, %25 : vector<2x4xf32>
    %cst_13 = arith.constant 1.000000e+00 : f32
    %27 = vector.broadcast %cst_13 : f32 to vector<2x1xf32>
    %28 = arith.subf %27, %17 : vector<2x1xf32>
    %29 = vector.broadcast %28 : vector<2x1xf32> to vector<2x4xf32>
    %30 = arith.mulf %16, %29 : vector<2x4xf32>
    %31 = arith.addf %26, %30 : vector<2x4xf32>
    %32 = arith.divf %31, %13 : vector<2x4xf32>
    %33 = vector.shape_cast %32 : vector<2x4xf32> to vector<2x4x1xf32>
    %34 = vector.broadcast %33 : vector<2x4x1xf32> to vector<2x4x256xf32>
    %35 = arith.mulf %6, %34 : vector<2x4x256xf32>
    %36 = vector.shape_cast %24 : vector<2x4xf32> to vector<2x4x1xf32>
    %37 = vector.broadcast %36 : vector<2x4x1xf32> to vector<2x4x256xf32>
    %38 = arith.addf %35, %37 : vector<2x4x256xf32>
    %c0_14 = arith.constant 0 : index
    %c0_15 = arith.constant 0 : index
    %c0_16 = arith.constant 0 : index
    %39 = vector.load %arg4[%c0_14, %c0_15, %c0_16] : memref<2x4x256xf32, #tpu.memory_space<vmem>>, vector<2x4x256xf32>
    tpu.vector_store %arg4[%c0_14, %c0_15, %c0_16], %38 {strides = array<i32>} : memref<2x4x256xf32, #tpu.memory_space<vmem>>, vector<2x4x256xf32>,
    return
  }
  func.func @transform_0(%arg0: i32) -> (i32, i32, i32) {
    %c0_i32 = arith.constant 0 : i32
    %c0_i32_0 = arith.constant 0 : i32
    %c0_i32_1 = arith.constant 0 : i32
    %c0_i32_2 = arith.constant 0 : i32
    return %c0_i32, %c0_i32_0, %c0_i32_1 : i32, i32, i32
  }
  func.func @transform_1(%arg0: i32) -> (i32, i32) {
    %c0_i32 = arith.constant 0 : i32
    %c0_i32_0 = arith.constant 0 : i32
    %c0_i32_1 = arith.constant 0 : i32
    return %c0_i32, %c0_i32_0 : i32, i32
  }
  func.func @transform_2(%arg0: i32) -> (i32, i32) {
    %c0_i32 = arith.constant 0 : i32
    %c0_i32_0 = arith.constant 0 : i32
    %c0_i32_1 = arith.constant 0 : i32
    return %c0_i32, %c0_i32_0 : i32, i32
  }
  func.func @transform_3(%arg0: i32) -> (i32, i32, i32) {
    %c0_i32 = arith.constant 0 : i32
    %c0_i32_0 = arith.constant 0 : i32
    %c0_i32_1 = arith.constant 0 : i32
    %c0_i32_2 = arith.constant 0 : i32
    return %c0_i32, %c0_i32_0, %c0_i32_1 : i32, i32, i32
  }
}

</mosaic_0001>

<bundles_post_ra>
// kernel: tpu_custom_call.1
= control target key start
LH: loop header
LB: loop body
LE: loop exit
PB: predicated region body
PF: predicated region fallthrough
CT: control target
= control target key end

     0   :  { %8 = vsyncpa [#allocation3], 0  ;;  %s618_s0 = inlined_call_operand.hbm [shape: f32[2,4,256], index: 0, kind: input, shape index: {}]   ;;  %s619_s1 = inlined_call_operand.vmem [shape: f32[2,2], index: 1, kind: input, shape index: {}]   ;;  %s620_s2 = inlined_call_operand.vmem [shape: f32[2,1], index: 2, kind: input, shape index: {}]   ;;  %s621_s3 = inlined_call_operand.hbm [shape: f32[2,4,256], index: 3, kind: output, shape index: {}]  }
   0x1   :  { %9 = vsyncpa [#allocation4], 0  ;;  %s506_s12 = smov [#allocation2]   ;;  %s458_s16 = scalar_lea.hbm %s618_s0, 256 }
   0x2   :  { %s15_s13 = sshll.u32 %s506_s12, 4  ;;  %p459_p0 = scmp.ne.s32.totalorder %s618_s0, %s458_s16  ;;  %s16_s13 = int_to_ptr.vmem [resolvable:$true] %s15_s13 }
   0x3   :  { %p462_p1 = scmp.lt.u32.totalorder %s458_s16, %s618_s0 }
   0x5   :  { %p464_p2 = pnand %p462_p1, %p459_p0 }
   0x7   :  { %467 = shalt.err (!%p464_p2)
}
   0x8   :  { %s468_s21 = scalar_lea.vmem %s16_s13, 256  ;;  %p473_p4 = scmp.lt.s32.totalorder %s16_s13, %s16_s13 }
   0x9   :  { %p469_p3 = scmp.ne.s32.totalorder %s16_s13, %s468_s21  ;;  %p474_p5 = scmp.lt.s32.totalorder %s468_s21, %s468_s21 }
   0xb   :  { %p475_p6 = por %p474_p5, %p473_p4 }
   0xd   :  { %p476_p7 = pnand %p475_p6, %p469_p3 }
   0xf   :  { %479 = shalt.err (!%p476_p7)
}
  0x10   :  { %s507_s22 = smov 128   ;;  %s508_s23 = smov 8  }
  0x11   :  { %21 = dma.hbm_to_vmem [thread:$0]  %s618_s0, 256, %s16_s13, [#allocation3], %s507_s22, %s507_s22, %s508_s23  }
  0x12   :  { %502 = dma.done.wait [#allocation3], 256  }
  0x13   :  { %503 = vsyncadd [#allocation3], 4294967040  ;;  %vm37_vm0 = vcmask 1043456   ;;  %v29_v0 = vld [vmem:[#allocation2] sm:$0xff]  ;;  %v30_v1 = vld [vmem:[#allocation2 + $0x8] sm:$0xff]  ;;  %v509_v10 = vmov 0.0   ;;  %v56_v16 = vlaneseq }
  0x14   :  { %v33_v2 = vcombine.high %v29_v0, %v29_v0  ;;  %v38_v3 = vsel %vm37_vm0, %v29_v0, 0.0  ;;  %v34_v4 = vcombine.high %v30_v1, %v30_v1  ;;  %v43_v6 = vsel %vm37_vm0, %v30_v1, 0.0  ;;  %428 = vmatprep.subr.mxu0 %v509_v10  ;;  %433 = vmatprep.subr.mxu1 %v509_v10  ;;  %v280_v11 = vld [vmem:[%s620_s2] sm:$0x3] }
  0x15   :  { %vm510_vm1 = vmmov 0   ;;  %v511_v12 = vmov 0   ;;  %v297_v13 = vsub.f32 1.0, %v280_v11  ;;  %v512_v14 = vmov 839922192  }
  0x16   :  { %v39_v5 = vsel %vm37_vm0, %v33_v2, 0.0  ;;  %v44_v7 = vsel %vm37_vm0, %v34_v4, 0.0  ;;  %430 = vmatprep.mubr.msk.f32.mxu0 %vm510_vm1, %v509_v10  ;;  %435 = vmatprep.mubr.msk.f32.mxu1 %vm510_vm1, %v509_v10  ;;  %v54_v15 = vunpack.c.l.s4 %v512_v14  ;;  %v556_v18 = vshrl.u32 %v56_v16, 7  ;;  %v107_v32 = vld [vmem:[%s619_s1] sm:$0x3]  ;;  %s513_s1 = smov [#allocation5]  }
  0x17   :  { %v40_v8 = vadd.f32 %v39_v5, %v38_v3  ;;  %v45_v9 = vadd.f32 %v44_v7, %v43_v6  ;;  %447 = vset.pattern.permute.xlu1 %v511_v12  ;;  %446 = vset.pattern.permute.xlu0 %v511_v12  ;;  %v109_v20 = vand.u32 127, %v56_v16  ;;  %vm118_vm2 = vcmask 1041409   ;;  %s408_s28 = sshll.u32 %s513_s1, 4  ;;  %s409_s28 = int_to_ptr.vmem [resolvable:$true] %s408_s28 }
  0x18   :  { %v55_v17 = vunpack.c.0.s8 %v54_v15  ;;  %vm124_vm3 = vcmask 1041408   ;;  %vm120_vm4 = vcmask 15360   ;;  %s480_s29 = scalar_lea.vmem %s409_s28, 256  ;;  %p485_p9 = scmp.lt.s32.totalorder %s409_s28, %s409_s28 }
  0x19   :  { %41 = vadd.xlane.f32.xlu0 %v40_v8  ;;  %v112_v23 = vsub.s32 %v109_v20, %v556_v18  ;;  %p481_p8 = scmp.ne.s32.totalorder %s409_s28, %s480_s29  ;;  %p486_p10 = scmp.lt.s32.totalorder %s480_s29, %s480_s29 }
  0x1a   :  { %v559_v19 = vsub.s32 %v55_v17, %v556_v18 }
  0x1b   :  { %p487_p11 = por %p486_p10, %p485_p9 }
  0x1d   :  { %46 = vadd.xlane.f32.xlu0 %v45_v9  ;;  %v291_v9 = vsub.s32 1, %v556_v18  ;;  %p488_p12 = pnand %p487_p11, %p481_p8 }
  0x33   :  { %300 = vperm.xlu0 %446, %v297_v13  }
  0xa6   :  { %v42_v21 = vpop.xlane.xlu0 %41 }
  0xa7   :  { %v561_v22 = vmul.f32 0.00390625, %v42_v21 }
  0xa9   :  { %v59_v24 = vrot.slane %v561_v22, %v559_v19  ;;  %v113_v28 = vrot.slane %v561_v22, %v112_v23 }
  0xaa   :  { %v47_v25 = vpop.xlane.xlu0 %46 }
  0xab   :  { %v566_v26 = vmul.f32 0.00390625, %v47_v25  ;;  %v568_v27 = vsub.f32 %v29_v0, %v59_v24 }
  0xad   :  { %v66_v29 = vrot.slane %v566_v26, %v559_v19  ;;  %v117_v30 = vrot.slane %v566_v26, %v112_v23  ;;  %v71_v31 = vmul.f32 %v568_v27, %v568_v27 }
  0xaf   :  { %v119_v33 = vsel %vm118_vm2, %v117_v30, %v113_v28  ;;  %v75_v34 = vcombine.high %v71_v31, %v71_v31  ;;  %v580_v35 = vsub.f32 %v30_v1, %v66_v29  ;;  %v79_v36 = vsel %vm37_vm0, %v71_v31, 0.0 }
  0xb0   :  { %429 = vmatpush3.msk.msra.mxu0 %vm124_vm3, %v119_v33  ;;  %v287_v1 = vsub.s32 0, %v556_v18 }
  0xb1   :  { %431 = vmatmul.mubr.msk.f32.vlgmr.msra.gmra.mrb[0].mxu0 %vm120_vm4, %v107_v32  ;;  %v80_v37 = vsel %vm37_vm0, %v75_v34, 0.0  ;;  %v72_v38 = vmul.f32 %v580_v35, %v580_v35 }
  0xb2   :  { %v81_v39 = vadd.f32 %v80_v37, %v79_v36  ;;  %v301_v63 = vpop.permute.xlu0 %300 }
  0xb3   :  { %v76_v40 = vcombine.high %v72_v38, %v72_v38  ;;  %v84_v41 = vsel %vm37_vm0, %v72_v38, 0.0 }
  0xb4   :  { %82 = vadd.xlane.f32.xlu1 %v81_v39 }
  0xb5   :  { %v85_v42 = vsel %vm37_vm0, %v76_v40, 0.0 }
  0xb6   :  { %v86_v43 = vadd.f32 %v85_v42, %v84_v41 }
  0xb8   :  { %87 = vadd.xlane.f32.xlu1 %v86_v43 }
  0xc9   :  { %283 = vperm.xlu1 %447, %v280_v11  }
 0x141   :  { %v83_v44 = vpop.xlane.xlu1 %82 }
 0x142   :  { %v89_v45 = vmul.f32 0.003921569, %v83_v44 }
 0x144   :  { %v91_v46 = vadd.f32 1e-06, %v89_v45 }
 0x145   :  { %v88_v47 = vpop.xlane.xlu1 %87 }
 0x146   :  { %450 = vrsqrt.f32 %v91_v46  ;;  %v90_v48 = vmul.f32 0.003921569, %v88_v47  ;;  %vm95_vm5 = vcmp.eq.f32.partialorder %v91_v46, inf  ;;  %v98_v54 = vand.u32 2147483648, %v91_v46 }
 0x147   :  { %vm97_vm6 = vcmp.eq.f32.partialorder %v91_v46, 0.0 }
 0x148   :  { %v92_v49 = vadd.f32 1e-06, %v90_v48 }
 0x149   :  { %v284_v12 = vpop.permute.xlu1 %283 }
 0x14a   :  { %452 = vrsqrt.f32 %v92_v49  ;;  %vm102_vm7 = vcmp.eq.f32.partialorder %v92_v49, inf  ;;  %v105_v57 = vand.u32 2147483648, %v92_v49  ;;  %vm104_vm8 = vcmp.eq.f32.partialorder %v92_v49, 0.0 }
 0x14b   :  { %v288_v14 = vrot.slane %v284_v12, %v287_v1  ;;  %v292_v17 = vrot.slane %v284_v12, %v291_v9 }
 0x14d   :  { %v296_v30 = vmul.f32 %v292_v17, %v566_v26 }
 0x150   :  { %v451_v50 = vpop.eup %450 }
 0x151   :  { %v94_v51 = vmul.f32 %v451_v50, %v91_v46 }
 0x153   :  { %v96_v52 = vsel %vm95_vm5, %v91_v46, %v94_v51 }
 0x154   :  { %v453_v53 = vpop.eup %452  ;;  %v99_v56 = vsel %vm97_vm6, %v98_v54, %v96_v52 }
 0x155   :  { %v101_v55 = vmul.f32 %v453_v53, %v92_v49  ;;  %v202_v60 = vrot.slane %v99_v56, %v112_v23  ;;  %454 = vrcp.f32 %v99_v56  ;;  %v323_v15 = vmul.f32 %v288_v14, %v99_v56 }
 0x157   :  { %v103_v58 = vsel %vm102_vm7, %v92_v49, %v101_v55 }
 0x158   :  { %v106_v59 = vsel %vm104_vm8, %v105_v57, %v103_v58 }
 0x159   :  { %v206_v61 = vrot.slane %v106_v59, %v112_v23  ;;  %456 = vrcp.f32 %v106_v59  ;;  %v324_v24 = vmul.f32 %v292_v17, %v106_v59 }
 0x15b   :  { %v207_v62 = vsel %vm118_vm2, %v206_v61, %v202_v60 }
 0x15c   :  { %434 = vmatpush3.msk.msra.mxu1 %vm124_vm3, %v207_v62 }
 0x15d   :  { %436 = vmatmul.mubr.msk.f32.vlgmr.msra.gmra.mrb[0].mxu1 %vm120_vm4, %v107_v32  ;;  %v295_v32 = vmul.f32 %v288_v14, %v561_v22 }
 0x15f   :  { %v455_v21 = vpop.eup %454 }
 0x163   :  { %v457_v18 = vpop.eup %456 }
 0x184   :  { %v193_v0 = vpop.f32.mrb[0].mxu0 }
 0x185   :  { %v303_v2 = vmul.f32 %v301_v63, %v193_v0  ;;  %v432_v3 = vpop.f32.mrb[1].mxu0 }
 0x187   :  { %v308_v4 = vrot.slane %v303_v2, %v287_v1  ;;  %v315_v11 = vrot.slane %v303_v2, %v291_v9 }
 0x189   :  { %310 = vbcast.lane.b32.xlu1 %v308_v4, 256 }
 0x1fb   :  { %v311_v13 = vpop.permute.xlu1 %310 }
 0x1fc   :  { %v321_v34 = vadd.f32 %v311_v13, %v295_v32 }
 0x230   :  { %v276_v5 = vpop.f32.mrb[0].mxu1 }
 0x231   :  { %v325_v6 = vmul.f32 %v301_v63, %v276_v5  ;;  %v437_v7 = vpop.f32.mrb[1].mxu1 }
 0x233   :  { %v330_v8 = vrot.slane %v325_v6, %v287_v1  ;;  %v337_v10 = vrot.slane %v325_v6, %v291_v9 }
 0x235   :  { %332 = vbcast.lane.b32.xlu1 %v330_v8, 256 }
 0x239   :  { %339 = vbcast.lane.b32.xlu1 %v337_v10, 256 }
 0x23d   :  { %317 = vbcast.lane.b32.xlu1 %v315_v11, 256 }
 0x2a7   :  { %v333_v16 = vpop.permute.xlu1 %332 }
 0x2a8   :  { %v343_v20 = vadd.f32 %v333_v16, %v323_v15 }
 0x2aa   :  { %v346_v23 = vmul.f32 %v455_v21, %v343_v20 }
 0x2ab   :  { %v340_v25 = vpop.permute.xlu1 %339 }
 0x2ac   :  { %v344_v28 = vadd.f32 %v340_v25, %v324_v24  ;;  %351 = vperm.xlu1 %447, %v346_v23  }
 0x2ae   :  { %v348_v29 = vmul.f32 %v457_v18, %v344_v28 }
 0x2af   :  { %v318_v31 = vpop.permute.xlu1 %317 }
 0x2b0   :  { %v322_v33 = vadd.f32 %v318_v31, %v296_v30  ;;  %355 = vperm.xlu1 %447, %v348_v29  }
 0x2b2   :  { %381 = vperm.xlu0 %446, %v322_v33  }
 0x2b4   :  { %377 = vperm.xlu1 %447, %v321_v34  }
 0x32b   :  { %v352_v36 = vpop.permute.xlu1 %351 }
 0x32c   :  { %v363_v38 = vrot.slane %v352_v36, %v559_v19 }
 0x32e   :  { %v373_v22 = vmul.f32 %v363_v38, %v568_v27 }
 0x32f   :  { %v356_v37 = vpop.permute.xlu1 %355 }
 0x330   :  { %v370_v39 = vrot.slane %v356_v37, %v559_v19 }
 0x331   :  { %v382_v40 = vpop.permute.xlu0 %381 }
 0x332   :  { %v374_v41 = vmul.f32 %v370_v39, %v580_v35  ;;  %v396_v42 = vrot.slane %v382_v40, %v559_v19 }
 0x333   :  { %v378_v26 = vpop.permute.xlu1 %377 }
 0x334   :  { %v400_v43 = vadd.f32 %v396_v42, %v374_v41  ;;  %v389_v44 = vrot.slane %v378_v26, %v559_v19 }
 0x336   :  { %402 = vst [vmem:[#allocation5 + $0x8] sm:$0xff] %v400_v43  ;;  %v399_v45 = vadd.f32 %v389_v44, %v373_v22 }
 0x338   :  { %401 = vst [vmem:[#allocation5] sm:$0xff] %v399_v45 }
 0x339   :  { %491 = shalt.err (!%p488_p12)
}
 0x33a   :  { %s492_s5 = scalar_lea.hbm %s621_s3, 256 }
 0x33b   :  { %p493_p13 = scmp.ne.s32.totalorder %s621_s3, %s492_s5  ;;  %p496_p0 = scmp.lt.u32.totalorder %s492_s5, %s621_s3 }
 0x33d   :  { %p498_p1 = pnand %p496_p0, %p493_p13 }
 0x33f   :  { %501 = shalt.err (!%p498_p1)
}
 0x340   :  { %414 = dma.vmem_to_hbm [thread:$0]  %s409_s28, 256, %s621_s3, [#allocation4], %s507_s22, %s507_s22, %s508_s23  }
 0x341   :  { %504 = dma.done.wait [#allocation4], 256  }
 0x342   :  { %505 = vsyncadd [#allocation4], 4294967040 }
 0x343   :  { %418 = vsyncpa [#allocation3], 1 }
 0x344   :  { %419 = vsyncpa [#allocation4], 1 }

</bundles_post_ra>
